<compile_context>
chip_gen: v5e
topology: v5e:2x2
jax: 0.10.0
libtpu: 0.0.40
codegen_flags: <defaults>
</compile_context>

<pallas_src>
import math

import jax
import jax.numpy as jnp
from jax import lax
from jax.experimental import pallas as pl
from jax.experimental.pallas import tpu as pltpu


def _round_up(x, m):
    return ((x + m - 1) // m) * m


def naive_bayes_forward(x, weight, bias, *, tb_max=512, tv_max=8192,
                        compute_dtype=jnp.bfloat16):
    """x: (B, ...) flattened to (B, V). weight: (2, V) (nn.Linear layout). bias: (2,)."""
    b = x.shape[0]
    x_flat = x.reshape(b, -1)                      # x.view(x.size(0), -1)
    v = x_flat.shape[1]

    # ---- batch tiling: minimal ragged waste, >=2 parallel tiles for megacore ----
    n_i = pl.cdiv(b, tb_max)
    if b >= 16:                                    # give v7x's 2nd TensorCore work
        n_i = max(n_i, 2)
    tb = _round_up(pl.cdiv(b, n_i), 8)
    n_i = pl.cdiv(b, tb)

    # ---- vocab (reduction) tiling ----
    tv = min(tv_max, _round_up(v, 128))
    n_k = pl.cdiv(v, tv)
    rem = v - (n_k - 1) * tv                       # valid columns of the last vocab tile
    needs_mask = rem != tv                         # static

    def kernel(x_ref, w_ref, b_ref, o_ref):
        # x_ref: (tb, tv)   w_ref: (2, tv)   b_ref: (2,) in SMEM   o_ref: (tb, 2) f32
        k = pl.program_id(1)
        last_k = pl.num_programs(1) - 1

        @pl.when(k == 0)
        def _init():
            o_ref[...] = jnp.zeros_like(o_ref)

        def accumulate(x_blk, w_blk):
            # Contract the vocab axis: (tb, tv) . (2, tv) -> (tb, 2), f32 accumulation.
            o_ref[...] += lax.dot_general(
                x_blk.astype(compute_dtype), w_blk.astype(compute_dtype),
                dimension_numbers=(((1,), (1,)), ((), ())),
                preferred_element_type=jnp.float32)

        if needs_mask:
            @pl.when(k != last_k)
            def _full_tile():
                accumulate(x_ref[...], w_ref[...])

            @pl.when(k == last_k)
            def _tail_tile():
                # Past-`rem` columns of the last tile hold unspecified VMEM data for
                # BOTH x and w; zero each side explicitly (0 * garbage could be NaN).
                xm = lax.broadcasted_iota(jnp.int32, (tb, tv), 1) < rem
                wm = lax.broadcasted_iota(jnp.int32, (2, tv), 1) < rem
                accumulate(jnp.where(xm, x_ref[...], 0.0),
                           jnp.where(wm, w_ref[...], 0.0))
        else:
            accumulate(x_ref[...], w_ref[...])

        @pl.when(k == last_k)
        def _finalize():
            acc = o_ref[...]                                       # (tb, 2)
            lane = lax.broadcasted_iota(jnp.int32, acc.shape, 1)
            logits = acc + jnp.where(lane == 0, b_ref[0], b_ref[1])
            m = jnp.max(logits, axis=-1, keepdims=True)            # stable log-softmax
            z = logits - m
            lse = jnp.log(jnp.sum(jnp.exp(z), axis=-1, keepdims=True))
            o_ref[...] = (z - lse).astype(o_ref.dtype)

    grid = (n_i, n_k)

    x_item = x_flat.dtype.itemsize
    w_item = weight.dtype.itemsize
    vmem_bytes = (2 * tb * tv * x_item          # double-buffered x tiles (the only big stream)
                  + 2 * 8 * tv * w_item         # (2, tv) weight tiles, sublane-padded to 8
                  + 2 * tb * 128 * 4            # (tb, 2) f32 output block, lane-padded to 128
                  + (4 << 20))                  # compiler scratch slack
    vmem_limit = int(min(max(vmem_bytes, 16 << 20), 50 << 20))   # stays inside v7x 64 MiB

    cost = pl.CostEstimate(
        flops=4 * b * v,                        # 2 classes * 2*B*V MAC flops
        transcendentals=3 * b,                  # 2 exp + 1 log per row
        bytes_accessed=(b * v * x_item          # x read exactly once
                        + n_i * 2 * v * w_item  # weight re-streamed per batch tile
                        + b * 2 * 4),
    )

    return pl.pallas_call(
        kernel,
        out_shape=jax.ShapeDtypeStruct((b, 2), jnp.float32),
        grid_spec=pltpu.PrefetchScalarGridSpec(
            num_scalar_prefetch=0,
            grid=grid,
            in_specs=[
                pl.BlockSpec((tb, tv), lambda i, k: (i, k)),          # x: streamed once
                pl.BlockSpec((2, tv), lambda i, k: (0, k)),           # weight: lane-dense (2, V)
                pl.BlockSpec(memory_space=pltpu.MemorySpace.SMEM),    # bias: 2 scalars in SMEM
            ],
            out_specs=pl.BlockSpec((tb, 2), lambda i, k: (i, 0)),     # resident accumulator
        ),
        compiler_params=pltpu.CompilerParams(
            dimension_semantics=("parallel", "arbitrary"),
            vmem_limit_bytes=vmem_limit,
        ),
        cost_estimate=cost,
    )(x_flat, weight, bias)


def _reference(x, weight, bias, compute_dtype=jnp.bfloat16):
    b = x.shape[0]
    xf = x.reshape(b, -1)
    logits = jnp.dot(xf.astype(compute_dtype), weight.astype(compute_dtype).T,
                     preferred_element_type=jnp.float32) + bias
    return jax.nn.log_softmax(logits, axis=-1)


if __name__ == "__main__":
    key = jax.random.PRNGKey(0)
    k_x, k_w, k_b, k_x2 = jax.random.split(key, 4)

    # --- case 1: aligned toy shapes (stand-in for len(TEXT.vocab)) -----------
    batch, vocab_size = 8, 256
    x = jax.random.randint(k_x, (batch, vocab_size), 0, 5).astype(jnp.float32)
    bound = 1.0 / math.sqrt(vocab_size)            # nn.Linear default init bound
    weight = jax.random.uniform(k_w, (2, vocab_size), jnp.float32, -bound, bound)
    bias = jax.random.uniform(k_b, (2,), jnp.float32, -bound, bound)

    out = jax.block_until_ready(naive_bayes_forward(x, weight, bias))
    ref = _reference(x, weight, bias)
    assert out.shape == (batch, 2)
    assert jnp.allclose(out, ref, atol=2e-3, rtol=2e-3), float(jnp.max(jnp.abs(out - ref)))

    # --- case 2: unaligned shapes exercise in-kernel ragged-tile masking -----
    batch2, vocab2 = 9, 300
    x2 = jax.random.randint(k_x2, (batch2, vocab2), 0, 5).astype(jnp.float32)
    bound2 = 1.0 / math.sqrt(vocab2)
    weight2 = jax.random.uniform(k_w, (2, vocab2), jnp.float32, -bound2, bound2)
    bias2 = jax.random.uniform(k_b, (2,), jnp.float32, -bound2, bound2)

    out2 = jax.block_until_ready(naive_bayes_forward(x2, weight2, bias2))
    ref2 = _reference(x2, weight2, bias2)
    assert out2.shape == (batch2, 2)
    assert jnp.allclose(out2, ref2, atol=2e-3, rtol=2e-3), float(jnp.max(jnp.abs(out2 - ref2)))

    print("KERNEL_OK")
</pallas_src>

<mosaic_0001>
module attributes {stable_mosaic.version = 11 : i64} {
  func.func @kernel(%arg0: i32, %arg1: i32, %arg2: memref<8x256xf32, #tpu.memory_space<vmem>>, %arg3: memref<2x256xf32, #tpu.memory_space<vmem>>, %arg4: memref<2xf32, #tpu.memory_space<smem>>, %arg5: memref<8x2xf32, #tpu.memory_space<vmem>>) attributes {dimension_semantics = [#tpu.dimension_semantics<parallel>, #tpu.dimension_semantics<arbitrary>], iteration_bounds = array<i64: 1, 1>, scalar_prefetch = 0 : i64, scratch_operands = 0 : i64, tpu.core_type = #tpu.core_type<tc>, window_params = [{transform_indices = @transform_0, window_bounds = array<i64: 8, 256>}, {transform_indices = @transform_1, window_bounds = array<i64: 2, 256>}, {transform_indices = @transform_2, window_bounds = array<i64: 2>}, {transform_indices = @transform_3, window_bounds = array<i64: 8, 2>}]} {
    %c0_i32 = arith.constant 0 : i32
    %0 = arith.cmpi eq, %arg1, %c0_i32 : i32
    %1 = arith.extui %0 : i1 to i32
    %c0_i32_0 = arith.constant 0 : i32
    %2 = arith.cmpi ne, %1, %c0_i32_0 : i32
    scf.if %2 {
      %cst_10 = arith.constant 0.000000e+00 : f32
      %14 = vector.broadcast %cst_10 : f32 to vector<8x2xf32>
      %c0_11 = arith.constant 0 : index
      %c0_12 = arith.constant 0 : index
      %15 = vector.load %arg5[%c0_11, %c0_12] : memref<8x2xf32, #tpu.memory_space<vmem>>, vector<8x2xf32>
      tpu.vector_store %arg5[%c0_11, %c0_12], %14 {strides = array<i32>} : memref<8x2xf32, #tpu.memory_space<vmem>>, vector<8x2xf32>,
    } else {
    }
    %c0 = arith.constant 0 : index
    %c0_1 = arith.constant 0 : index
    %3 = vector.load %arg2[%c0, %c0_1] : memref<8x256xf32, #tpu.memory_space<vmem>>, vector<8x256xf32>
    %c0_2 = arith.constant 0 : index
    %c0_3 = arith.constant 0 : index
    %4 = vector.load %arg3[%c0_2, %c0_3] : memref<2x256xf32, #tpu.memory_space<vmem>>, vector<2x256xf32>
    %c0_4 = arith.constant 0 : index
    %c0_5 = arith.constant 0 : index
    %5 = vector.load %arg5[%c0_4, %c0_5] : memref<8x2xf32, #tpu.memory_space<vmem>>, vector<8x2xf32>
    %6 = arith.truncf %3 : vector<8x256xf32> to vector<8x256xbf16>
    %7 = arith.truncf %4 : vector<2x256xf32> to vector<2x256xbf16>
    %cst = arith.constant dense<0.000000e+00> : vector<8x2xf32>
    %8 = tpu.matmul %6, %7, %cst {dimension_numbers = #tpu.dot_dimension_numbers<[1], [1], [0], [0], [0, 0, 1, 0], [], []>} : vector<8x256xbf16>, vector<2x256xbf16>, vector<8x2xf32> -> vector<8x2xf32>
    %9 = arith.addf %5, %8 : vector<8x2xf32>
    %c0_6 = arith.constant 0 : index
    %c0_7 = arith.constant 0 : index
    %10 = vector.load %arg5[%c0_6, %c0_7] : memref<8x2xf32, #tpu.memory_space<vmem>>, vector<8x2xf32>
    tpu.vector_store %arg5[%c0_6, %c0_7], %9 {strides = array<i32>} : memref<8x2xf32, #tpu.memory_space<vmem>>, vector<8x2xf32>,
    %c0_i32_8 = arith.constant 0 : i32
    %11 = arith.cmpi eq, %arg1, %c0_i32_8 : i32
    %12 = arith.extui %11 : i1 to i32
    %c0_i32_9 = arith.constant 0 : i32
    %13 = arith.cmpi ne, %12, %c0_i32_9 : i32
    scf.if %13 {
      %c0_10 = arith.constant 0 : index
      %c0_11 = arith.constant 0 : index
      %14 = vector.load %arg5[%c0_10, %c0_11] : memref<8x2xf32, #tpu.memory_space<vmem>>, vector<8x2xf32>
      %15 = tpu.iota {dimensions = array<i32: 1>} : vector<8x2xi32>
      %c0_i32_12 = arith.constant 0 : i32
      %16 = vector.broadcast %c0_i32_12 : i32 to vector<8x2xi32>
      %17 = arith.cmpi eq, %15, %16 : vector<8x2xi32>
      %c0_13 = arith.constant 0 : index
      %18 = memref.load %arg4[%c0_13] : memref<2xf32, #tpu.memory_space<smem>>
      %c1 = arith.constant 1 : index
      %19 = memref.load %arg4[%c1] : memref<2xf32, #tpu.memory_space<smem>>
      %20 = vector.broadcast %18 : f32 to vector<8x2xf32>
      %21 = vector.broadcast %19 : f32 to vector<8x2xf32>
      %22 = arith.select %17, %20, %21 : vector<8x2xi1>, vector<8x2xf32>
      %23 = arith.addf %14, %22 : vector<8x2xf32>
      %cst_14 = arith.constant dense<0xFF800000> : vector<8xf32>
      %24 = vector.multi_reduction <maximumf>, %23, %cst_14 [1] : vector<8x2xf32> to vector<8xf32>
      %25 = vector.shape_cast %24 : vector<8xf32> to vector<8x1xf32>
      %26 = vector.broadcast %25 : vector<8x1xf32> to vector<8x2xf32>
      %27 = arith.subf %23, %26 : vector<8x2xf32>
      %28 = math.exp %27 : vector<8x2xf32>
      %cst_15 = arith.constant dense<0.000000e+00> : vector<8xf32>
      %29 = vector.multi_reduction <add>, %28, %cst_15 [1] : vector<8x2xf32> to vector<8xf32>
      %30 = vector.shape_cast %29 : vector<8xf32> to vector<8x1xf32>
      %31 = math.log %30 : vector<8x1xf32>
      %32 = vector.broadcast %31 : vector<8x1xf32> to vector<8x2xf32>
      %33 = arith.subf %27, %32 : vector<8x2xf32>
      %c0_16 = arith.constant 0 : index
      %c0_17 = arith.constant 0 : index
      %34 = vector.load %arg5[%c0_16, %c0_17] : memref<8x2xf32, #tpu.memory_space<vmem>>, vector<8x2xf32>
      tpu.vector_store %arg5[%c0_16, %c0_17], %33 {strides = array<i32>} : memref<8x2xf32, #tpu.memory_space<vmem>>, vector<8x2xf32>,
    } else {
    }
    return
  }
  func.func @transform_0(%arg0: i32, %arg1: i32) -> (i32, i32) {
    %c0_i32 = arith.constant 0 : i32
    return %arg0, %arg1 : i32, i32
  }
  func.func @transform_1(%arg0: i32, %arg1: i32) -> (i32, i32) {
    %c0_i32 = arith.constant 0 : i32
    %c0_i32_0 = arith.constant 0 : i32
    return %c0_i32, %arg1 : i32, i32
  }
  func.func @transform_2(%arg0: i32, %arg1: i32) -> i32 {
    %c0_i32 = arith.constant 0 : i32
    %c0_i32_0 = arith.constant 0 : i32
    return %c0_i32 : i32
  }
  func.func @transform_3(%arg0: i32, %arg1: i32) -> (i32, i32) {
    %c0_i32 = arith.constant 0 : i32
    %c0_i32_0 = arith.constant 0 : i32
    return %arg0, %c0_i32 : i32, i32
  }
}

</mosaic_0001>

<bundles_post_ra>
// kernel: tpu_custom_call.1
= control target key start
LH: loop header
LB: loop body
LE: loop exit
PB: predicated region body
PF: predicated region fallthrough
CT: control target
= control target key end

     0   :  { %8 = vsyncpa [#allocation3], 0  ;;  %s266_s0 = inlined_call_operand.hbm [shape: f32[8,256], index: 0, kind: input, shape index: {}]   ;;  %s267_s1 = inlined_call_operand.hbm [shape: f32[2,256], index: 1, kind: input, shape index: {}]   ;;  %s268_s2 = inlined_call_operand.vmem [shape: f32[2], index: 2, kind: input, shape index: {}]   ;;  %s269_s3 = inlined_call_operand.vmem [shape: f32[8,2], index: 3, kind: output, shape index: {}]  }
   0x1   :  { %9 = vsyncpa [#allocation6], 0  ;;  %s16_s14 = sshll.u32 %s266_s0, 4  ;;  %s17_s14 = int_to_ptr.hbm [resolvable:$true] %s16_s14 }
   0x2   :  { %10 = vsyncpa [#allocation4], 0  ;;  %s213_s15 = smov [#allocation2]   ;;  %s27_s19 = sshll.u32 %s267_s1, 4  ;;  %s28_s19 = int_to_ptr.hbm [resolvable:$true] %s27_s19 }
   0x3   :  { %s18_s16 = sshll.u32 %s213_s15, 4  ;;  %s214_s20 = smov [#allocation5]   ;;  %s19_s16 = int_to_ptr.vmem [resolvable:$true] %s18_s16 }
   0x4   :  { %21 = dma.hbm_to_vmem [thread:$0]  %s17_s14, 256, %s19_s16, [#allocation3]  }
   0x5   :  { %s29_s21 = sshll.u32 %s214_s20, 4  ;;  %s38_s24 = sshll.u32 %s268_s2, 4  ;;  %s30_s21 = int_to_ptr.vmem [resolvable:$true] %s29_s21  ;;  %s39_s24 = int_to_ptr.vmem [resolvable:$true] %s38_s24 }
   0x6   :  { %32 = dma.hbm_to_vmem [thread:$0]  %s28_s19, 64, %s30_s21, [#allocation6]  }
   0x7   :  { %s215_s0 = smov [#allocation7]  }
   0x8   :  { %41 = dma.vmem_to_smem %s39_s24, 16, %s215_s0, [#allocation4]  }
   0x9   :  { %207 = dma.done.wait [#allocation3], 256  }
   0xa   :  { %208 = vsyncadd [#allocation3], 4294967040 }
   0xb   :  { %209 = dma.done.wait [#allocation6], 64  }
   0xc   :  { %210 = vsyncadd [#allocation6], 4294967232 }
   0xd   :  { %211 = dma.done.wait [#allocation4], 16  }
   0xe   :  { %212 = vsyncadd [#allocation4], 4294967280 }
   0xf   :  { %54 = sfence }
  0x10   :  { %v64_v0 = vld [vmem:[#allocation5] sm:$0xf]  ;;  %v62_v5 = vld [vmem:[#allocation2] sm:$0xff]  ;;  %v63_v6 = vld [vmem:[#allocation2 + $0x8] sm:$0xff]  ;;  %vm60_vm0 = vcmask 15360   ;;  %v216_v9 = vmov 0.0   ;;  %v109_v10 = vlaneseq }
  0x11   :  { %69 = vst [vmem:[#allocation1] ss:$4 sm:$0xff] %v64_v0  ;;  %v66_v7 = vpack.c.bf16 %v62_v5, %v62_v5  ;;  %v67_v8 = vpack.c.bf16 %v63_v6, %v63_v6  ;;  %s112_s25 = sld [smem:[#allocation7]] }
  0x12   :  { %61 = vst.msk [vmem:[%s269_s3] sm:$0xff] %vm60_vm0, %v216_v9  ;;  %s138_s26 = sld [smem:[#allocation7 + $0x1]]  ;;  %v110_v16 = vand.u32 127, %v109_v10 }
  0x14   :  { %vm111_vm1 = vcmp.eq.s32.totalorder %v110_v16, 0 }
  0x17   :  { %v114_v17 = vstv %s112_s25 }
  0x18   :  { %v70_v1 = vld.sshfl [vmem:[#allocation1] sm:$0xff pattern:$0x73625140]  ;;  %v71_v2 = vld.sshfl [vmem:[#allocation1 + $0x8] sm:$0xff pattern:$0x73625140]  ;;  %v115_v18 = vstv %s138_s26 }
  0x19   :  { %v74_v3 = vpack.c.bf16 %v70_v1, %v70_v1  ;;  %v75_v4 = vpack.c.bf16 %v71_v2, %v71_v2  ;;  %v65_v12 = vld [vmem:[%s269_s3] sm:$0xff]  ;;  %v116_v21 = vsel %vm111_vm1, %v114_v17, %v115_v18 }
  0x1b   :  { %83 = vmatpush.bf16.xpose.msra.mxu0 %v74_v3  ;;  %96 = vmatpush.bf16.xpose.msra.mxu1 %v75_v4 }
  0x22   :  { %84 = vmatmul.bf16.vlgmr.msra.gmra.mxu0 %v66_v7  ;;  %97 = vmatmul.bf16.vlgmr.msra.gmra.mxu1 %v67_v8 }
  0x9f   :  { %v85_v11 = vpop.f32.mrf.mxu0  ;;  %v98_v13 = vpop.f32.mrf.mxu1 }
  0xa0   :  { %v99_v14 = vadd.f32 %v98_v13, %v85_v11 }
  0xa2   :  { %v102_v15 = vadd.f32 %v99_v14, %v65_v12 }
  0xa4   :  { %104 = vst.msk [vmem:[%s269_s3] sm:$0xff] %vm60_vm0, %v102_v15 }
  0xa7   :  { %v87_v19 = vpop.f32.mrf.mxu0  ;;  %v100_v20 = vpop.f32.mrf.mxu1 }
  0xab   :  { %v108_v22 = vld [vmem:[%s269_s3] sm:$0xff] }
  0xac   :  { %v117_v23 = vadd.f32 %v116_v21, %v108_v22 }
  0xae   :  { %v118_v24 = vsel %vm60_vm0, %v117_v23, -inf }
  0xaf   :  { %119 = vmax.xlane.f32.xlu0 %v118_v24 }
 0x122   :  { %v120_v25 = vpop.xlane.xlu0 %119 }
 0x123   :  { %v121_v26 = vsub.f32 %v117_v23, %v120_v25 }
 0x125   :  { %v122_v27 = vmul.f32 1.442695, %v121_v26 }
 0x127   :  { %143 = vpow2.f32 %v122_v27 }
 0x12d   :  { %v144_v28 = vpop.eup %143 }
 0x12e   :  { %v124_v29 = vsel %vm60_vm0, %v144_v28, 0.0 }
 0x12f   :  { %125 = vadd.xlane.f32.xlu0 %v124_v29 }
 0x1a2   :  { %v126_v30 = vpop.xlane.xlu0 %125 }
 0x1a3   :  { %145 = vlog2.f32 %v126_v30 }
 0x1a9   :  { %v146_v31 = vpop.eup %145 }
 0x1aa   :  { %v128_v32 = vmul.f32 0.6931472, %v146_v31 }
 0x1ac   :  { %v129_v33 = vsub.f32 %v121_v26, %v128_v32 }
 0x1ae   :  { %130 = vst.msk [vmem:[%s269_s3] sm:$0xff] %vm60_vm0, %v129_v33 }
 0x1af   :  { %135 = vsyncpa [#allocation3], 1 }
 0x1b0   :  { %136 = vsyncpa [#allocation6], 1 }
 0x1b1   :  { %137 = vsyncpa [#allocation4], 1 }

</bundles_post_ra>
